<compile_context>
chip_gen: v7x
topology: tpu7x:2x2x1
jax: 0.10.0
libtpu: 0.0.40
codegen_flags: <defaults>
</compile_context>

<pallas_src>
import math

import jax
import jax.numpy as jnp
from jax.experimental import pallas as pl
from jax.experimental.pallas import tpu as pltpu

_LANE = 128


def _state_repr_kernel(data_ref, inv_ref, w_ref, b_ref, out_ref, acc_ref):
    # data_ref: (B_t, C, S_t) native dtype   inv_ref: (B_t, C)
    # w_ref:    (2C, D)                      b_ref:   (1, D)
    # out_ref:  (B_t, D) f32                 acc_ref: (B_t, C, 128) f32 scratch
    k = pl.program_id(1)

    @pl.when(k == 0)
    def _init():
        acc_ref[...] = jnp.full(acc_ref.shape, -jnp.inf, dtype=acc_ref.dtype)

    # Pure element-wise VPU running max over 128-lane chunks; chunks are loaded
    # directly from the ref (static, lane-aligned slices -> no relayout, low vreg
    # pressure). The cross-lane reduce is deferred to the final step.
    s_tile = data_ref.shape[-1]
    n_blocks = s_tile // _LANE
    acc = acc_ref[...]
    for j in range(n_blocks):
        blk = data_ref[:, :, j * _LANE:(j + 1) * _LANE]
        acc = jnp.maximum(acc, blk.astype(jnp.float32))
    acc_ref[...] = acc

    @pl.when(k == pl.num_programs(1) - 1)
    def _finalize():
        pooled = jnp.max(acc_ref[...], axis=-1)                       # (B_t, C), one XLU reduce
        x = jnp.concatenate(
            [pooled, inv_ref[...].astype(jnp.float32)], axis=1)       # (B_t, 2C) == concat in torch
        out = jnp.dot(x, w_ref[...].astype(jnp.float32),
                      preferred_element_type=jnp.float32)             # single fused K=2C matmul
        out += b_ref[...].astype(jnp.float32)
        out_ref[...] = out.astype(out_ref.dtype)


def state_repr_encoder_pooled(data, inventory, weight_t, bias,
                              *, s_tile_budget_bytes=4 * 1024 * 1024):
    """
    Args:
      data:      (B, C, W, L, H) spatial state representation (any float/int dtype;
                 DMA'd in native dtype, pooled before the f32 cast).
      inventory: (B, C) inventory vector.
      weight_t:  (2C, D) PRE-TRANSPOSED Linear weight of self.state_layer
                 (parameter-prep: weight.T done once, not per call).
      bias:      (D,) Linear bias.
    Returns:
      (B, D) float32
    """
    B, C, W, L, H = data.shape
    two_c, D = weight_t.shape
    assert two_c == 2 * C, "state_layer weight must have input dim 2*C"
    S = W * L * H

    data_flat = data.reshape(B, C, S)            # contiguous reshape, no copy / no upcast
    b2d = bias.reshape(1, D)

    # --- tile sizing -------------------------------------------------------
    b_tile = B if B <= 8 else 8
    itemsize = jnp.dtype(data_flat.dtype).itemsize
    s_tile = max(_LANE,
                 (s_tile_budget_bytes // (b_tile * C * itemsize)) // _LANE * _LANE)
    s_lane_pad = pl.cdiv(S, _LANE) * _LANE       # lane-align the spatial axis
    s_tile = min(s_tile, s_lane_pad)
    s_padded = pl.cdiv(S, s_tile) * s_tile       # full tiles only (no garbage in the max)

    if s_padded != S:
        if jnp.issubdtype(data_flat.dtype, jnp.floating):
            fill = jnp.array(-jnp.inf, dtype=data_flat.dtype)
        else:
            fill = jnp.array(jnp.iinfo(data_flat.dtype).min, dtype=data_flat.dtype)
        data_flat = jnp.pad(data_flat, ((0, 0), (0, 0), (0, s_padded - S)),
                            constant_values=fill)

    grid = (pl.cdiv(B, b_tile), s_padded // s_tile)

    grid_spec = pltpu.PrefetchScalarGridSpec(
        num_scalar_prefetch=0,
        grid=grid,
        in_specs=[
            pl.BlockSpec((b_tile, C, s_tile), lambda b, k: (b, 0, k)),  # streamed state data
            pl.BlockSpec((b_tile, C), lambda b, k: (b, 0)),             # inventory
            pl.BlockSpec((two_c, D), lambda b, k: (0, 0)),              # fused (2C, D) weight
            pl.BlockSpec((1, D), lambda b, k: (0, 0)),                  # bias
        ],
        out_specs=pl.BlockSpec((b_tile, D), lambda b, k: (b, 0)),
        scratch_shapes=[pltpu.VMEM((b_tile, C, _LANE), jnp.float32)],
    )

    return pl.pallas_call(
        _state_repr_kernel,
        out_shape=jax.ShapeDtypeStruct((B, D), jnp.float32),
        grid_spec=grid_spec,
        compiler_params=pltpu.CompilerParams(
            dimension_semantics=("parallel", "arbitrary"),   # B across cores, S is the reduction
            vmem_limit_bytes=32 * 1024 * 1024,
        ),
    )(data_flat, inventory, weight_t, b2d)


if __name__ == "__main__":
    # Synthetic, deterministic setup.
    # TeachSpatialStateRepr.get_num_data_channels() taken as C = 64 (synthetic),
    # so the state_layer input dim is 2C = 128.
    B, C, W, L, H = 2, 64, 8, 8, 8
    DMODEL = 128
    NHEAD = 8  # TODO(synk): task_layer (dmodel -> dmodel*nhead) exists in __init__ but is unused in forward.

    key = jax.random.PRNGKey(0)
    k_data, k_inv, k_w, k_b, k_task, k_act = jax.random.split(key, 6)

    data = jax.random.normal(k_data, (B, C, W, L, H), dtype=jnp.float32)
    inventory = jax.random.normal(k_inv, (B, C), dtype=jnp.float32)

    # nn.Linear(2C, dmodel) init: U(-1/sqrt(fan_in), 1/sqrt(fan_in))
    fan_in = 2 * C
    bound = 1.0 / math.sqrt(fan_in)
    weight = jax.random.uniform(k_w, (DMODEL, 2 * C), minval=-bound, maxval=bound,
                                dtype=jnp.float32)
    bias = jax.random.uniform(k_b, (DMODEL,), minval=-bound, maxval=bound,
                              dtype=jnp.float32)

    # Unused forward inputs (mirroring the PyTorch signature).
    task_embeddings = jax.random.normal(k_task, (B, DMODEL), dtype=jnp.float32)
    action_hist_embeddings = jax.random.normal(k_act, (B, DMODEL), dtype=jnp.float32)

    # Parameter prep (done ONCE, outside the per-call path): pre-transposed weight.
    weight_t = weight.T                                   # (2C, D)

    out = state_repr_encoder_pooled(data, inventory, weight_t, bias)
    out = jax.block_until_ready(out)

    # Pure-JAX reference check.
    pooled_ref = jnp.max(data.reshape(B, C, -1), axis=2)
    x_ref = jnp.concatenate([pooled_ref, inventory], axis=1)
    ref = x_ref @ weight.T + bias
    assert out.shape == (B, DMODEL)
    assert jnp.allclose(out, ref, atol=1e-5, rtol=1e-5)

    print("KERNEL_OK")
</pallas_src>

<mosaic_0001>
module attributes {stable_mosaic.version = 11 : i64} {
  func.func @_state_repr_kernel(%arg0: i32, %arg1: i32, %arg2: memref<2x64x512xf32, #tpu.memory_space<vmem>>, %arg3: memref<2x64xf32, #tpu.memory_space<vmem>>, %arg4: memref<128x128xf32, #tpu.memory_space<vmem>>, %arg5: memref<1x128xf32, #tpu.memory_space<vmem>>, %arg6: memref<2x128xf32, #tpu.memory_space<vmem>>, %arg7: memref<2x64x128xf32, #tpu.memory_space<vmem>>) attributes {dimension_semantics = [#tpu.dimension_semantics<parallel>, #tpu.dimension_semantics<arbitrary>], iteration_bounds = array<i64: 1, 1>, scalar_prefetch = 0 : i64, scratch_operands = 1 : i64, tpu.core_type = #tpu.core_type<tc>, window_params = [{transform_indices = @transform_0, window_bounds = array<i64: 2, 64, 512>}, {transform_indices = @transform_1, window_bounds = array<i64: 2, 64>}, {pipeline_mode = #tpu.pipeline_mode<synchronous>, transform_indices = @transform_2, window_bounds = array<i64: 128, 128>}, {pipeline_mode = #tpu.pipeline_mode<synchronous>, transform_indices = @transform_3, window_bounds = array<i64: 1, 128>}, {transform_indices = @transform_4, window_bounds = array<i64: 2, 128>}]} {
    %c0_i32 = arith.constant 0 : i32
    %0 = arith.cmpi eq, %arg1, %c0_i32 : i32
    %1 = arith.extui %0 : i1 to i32
    %c0_i32_0 = arith.constant 0 : i32
    %2 = arith.cmpi ne, %1, %c0_i32_0 : i32
    scf.if %2 {
      %cst = arith.constant 0xFF800000 : f32
      %16 = vector.broadcast %cst : f32 to vector<2x64x128xf32>
      %c0_17 = arith.constant 0 : index
      %c0_18 = arith.constant 0 : index
      %c0_19 = arith.constant 0 : index
      %17 = vector.load %arg7[%c0_17, %c0_18, %c0_19] : memref<2x64x128xf32, #tpu.memory_space<vmem>>, vector<2x64x128xf32>
      tpu.vector_store %arg7[%c0_17, %c0_18, %c0_19], %16 {strides = array<i32>} : memref<2x64x128xf32, #tpu.memory_space<vmem>>, vector<2x64x128xf32>,
    } else {
    }
    %c0 = arith.constant 0 : index
    %c0_1 = arith.constant 0 : index
    %c0_2 = arith.constant 0 : index
    %3 = vector.load %arg7[%c0, %c0_1, %c0_2] : memref<2x64x128xf32, #tpu.memory_space<vmem>>, vector<2x64x128xf32>
    %c0_3 = arith.constant 0 : index
    %c0_4 = arith.constant 0 : index
    %c0_5 = arith.constant 0 : index
    %4 = vector.load %arg2[%c0_3, %c0_4, %c0_5] : memref<2x64x512xf32, #tpu.memory_space<vmem>>, vector<2x64x128xf32>
    %5 = arith.maximumf %3, %4 : vector<2x64x128xf32>
    %c0_6 = arith.constant 0 : index
    %c0_7 = arith.constant 0 : index
    %c128 = arith.constant 128 : index
    %6 = vector.load %arg2[%c0_6, %c0_7, %c128] : memref<2x64x512xf32, #tpu.memory_space<vmem>>, vector<2x64x128xf32>
    %7 = arith.maximumf %5, %6 : vector<2x64x128xf32>
    %c0_8 = arith.constant 0 : index
    %c0_9 = arith.constant 0 : index
    %c256 = arith.constant 256 : index
    %8 = vector.load %arg2[%c0_8, %c0_9, %c256] : memref<2x64x512xf32, #tpu.memory_space<vmem>>, vector<2x64x128xf32>
    %9 = arith.maximumf %7, %8 : vector<2x64x128xf32>
    %c0_10 = arith.constant 0 : index
    %c0_11 = arith.constant 0 : index
    %c384 = arith.constant 384 : index
    %10 = vector.load %arg2[%c0_10, %c0_11, %c384] : memref<2x64x512xf32, #tpu.memory_space<vmem>>, vector<2x64x128xf32>
    %11 = arith.maximumf %9, %10 : vector<2x64x128xf32>
    %c0_12 = arith.constant 0 : index
    %c0_13 = arith.constant 0 : index
    %c0_14 = arith.constant 0 : index
    %12 = vector.load %arg7[%c0_12, %c0_13, %c0_14] : memref<2x64x128xf32, #tpu.memory_space<vmem>>, vector<2x64x128xf32>
    tpu.vector_store %arg7[%c0_12, %c0_13, %c0_14], %11 {strides = array<i32>} : memref<2x64x128xf32, #tpu.memory_space<vmem>>, vector<2x64x128xf32>,
    %c0_i32_15 = arith.constant 0 : i32
    %13 = arith.cmpi eq, %arg1, %c0_i32_15 : i32
    %14 = arith.extui %13 : i1 to i32
    %c0_i32_16 = arith.constant 0 : i32
    %15 = arith.cmpi ne, %14, %c0_i32_16 : i32
    scf.if %15 {
      %c0_17 = arith.constant 0 : index
      %c0_18 = arith.constant 0 : index
      %c0_19 = arith.constant 0 : index
      %16 = vector.load %arg7[%c0_17, %c0_18, %c0_19] : memref<2x64x128xf32, #tpu.memory_space<vmem>>, vector<2x64x128xf32>
      %cst = arith.constant dense<0xFF800000> : vector<2x64xf32>
      %17 = vector.multi_reduction <maximumf>, %16, %cst [2] : vector<2x64x128xf32> to vector<2x64xf32>
      %c0_20 = arith.constant 0 : index
      %c0_21 = arith.constant 0 : index
      %18 = vector.load %arg3[%c0_20, %c0_21] : memref<2x64xf32, #tpu.memory_space<vmem>>, vector<2x64xf32>
      %19 = tpu.concatenate %17, %18 in 1 : vector<2x64xf32>, vector<2x64xf32> -> vector<2x128xf32>
      %c0_22 = arith.constant 0 : index
      %c0_23 = arith.constant 0 : index
      %20 = vector.load %arg4[%c0_22, %c0_23] : memref<128x128xf32, #tpu.memory_space<vmem>>, vector<128x128xf32>
      %cst_24 = arith.constant dense<0.000000e+00> : vector<2x128xf32>
      %21 = tpu.matmul %19, %20, %cst_24 {dimension_numbers = #tpu.dot_dimension_numbers<[1], [0], [0], [1], [0, 0, 1, 1], [], []>} : vector<2x128xf32>, vector<128x128xf32>, vector<2x128xf32> -> vector<2x128xf32>
      %c0_25 = arith.constant 0 : index
      %c0_26 = arith.constant 0 : index
      %22 = vector.load %arg5[%c0_25, %c0_26] : memref<1x128xf32, #tpu.memory_space<vmem>>, vector<1x128xf32>
      %23 = vector.broadcast %22 : vector<1x128xf32> to vector<2x128xf32>
      %24 = arith.addf %21, %23 : vector<2x128xf32>
      %c0_27 = arith.constant 0 : index
      %c0_28 = arith.constant 0 : index
      %25 = vector.load %arg6[%c0_27, %c0_28] : memref<2x128xf32, #tpu.memory_space<vmem>>, vector<2x128xf32>
      tpu.vector_store %arg6[%c0_27, %c0_28], %24 {strides = array<i32>} : memref<2x128xf32, #tpu.memory_space<vmem>>, vector<2x128xf32>,
    } else {
    }
    return
  }
  func.func @transform_0(%arg0: i32, %arg1: i32) -> (i32, i32, i32) {
    %c0_i32 = arith.constant 0 : i32
    %c0_i32_0 = arith.constant 0 : i32
    return %arg0, %c0_i32, %arg1 : i32, i32, i32
  }
  func.func @transform_1(%arg0: i32, %arg1: i32) -> (i32, i32) {
    %c0_i32 = arith.constant 0 : i32
    %c0_i32_0 = arith.constant 0 : i32
    return %arg0, %c0_i32 : i32, i32
  }
  func.func @transform_2(%arg0: i32, %arg1: i32) -> (i32, i32) {
    %c0_i32 = arith.constant 0 : i32
    %c0_i32_0 = arith.constant 0 : i32
    %c0_i32_1 = arith.constant 0 : i32
    return %c0_i32, %c0_i32_0 : i32, i32
  }
  func.func @transform_3(%arg0: i32, %arg1: i32) -> (i32, i32) {
    %c0_i32 = arith.constant 0 : i32
    %c0_i32_0 = arith.constant 0 : i32
    %c0_i32_1 = arith.constant 0 : i32
    return %c0_i32, %c0_i32_0 : i32, i32
  }
  func.func @transform_4(%arg0: i32, %arg1: i32) -> (i32, i32) {
    %c0_i32 = arith.constant 0 : i32
    %c0_i32_0 = arith.constant 0 : i32
    return %arg0, %c0_i32 : i32, i32
  }
}

</mosaic_0001>

<bundles_post_ra>
// kernel: tpu_custom_call.1
= control target key start
LH: loop header
LB: loop body
LE: loop exit
PB: predicated region body
PF: predicated region fallthrough
CT: control target
= control target key end

     0   :  { %9 = vsyncpa [#allocation4], 0  ;;  %s755_s0 = inlined_call_operand.hbm [shape: f32[2,64,512], index: 0, kind: input, shape index: {}]   ;;  %s756_s1 = inlined_call_operand.vmem [shape: f32[2,64], index: 1, kind: input, shape index: {}]   ;;  %s757_s2 = inlined_call_operand.hbm [shape: f32[128,128], index: 2, kind: input, shape index: {}]   ;;  %s758_s3 = inlined_call_operand.vmem [shape: f32[1,128], index: 3, kind: input, shape index: {}]   ;;  %s759_s4 = inlined_call_operand.hbm [shape: f32[2,128], index: 4, kind: output, shape index: {}]  }
   0x1   :  { %10 = vsyncpa [#allocation7], 0 }
   0x2   :  { %11 = vsyncpa [#allocation5], 0  ;;  %s667_s15 = smov [#allocation3]   ;;  %s595_s19 = scalar_lea.hbm %s755_s0, 8192 }
   0x3   :  { %s17_s16 = sshll.u32 %s667_s15, 4  ;;  %p596_p0 = scmp.ne.s32.totalorder %s755_s0, %s595_s19  ;;  %s18_s16 = int_to_ptr.vmem [resolvable:$true] %s17_s16 }
   0x4   :  { %p599_p1 = scmp.lt.u32.totalorder %s595_s19, %s755_s0 }
   0x6   :  { %p601_p2 = pnand %p599_p1, %p596_p0 }
   0x8   :  { %604 = shalt.err (!%p601_p2)
}
   0x9   :  { %s605_s24 = scalar_lea.vmem %s18_s16, 8192  ;;  %p610_p4 = scmp.lt.s32.totalorder %s18_s16, %s18_s16 }
   0xa   :  { %p606_p3 = scmp.ne.s32.totalorder %s18_s16, %s605_s24  ;;  %p611_p5 = scmp.lt.s32.totalorder %s605_s24, %s605_s24 }
   0xc   :  { %p612_p6 = por %p611_p5, %p610_p4 }
   0xe   :  { %p613_p7 = pnand %p612_p6, %p606_p3 }
  0x10   :  { %616 = shalt.err (!%p613_p7)
}
  0x11   :  { %s668_s25 = smov 512   ;;  %s669_s26 = smov 32  }
  0x12   :  { %23 = dma.hbm_to_vmem [thread:$0]  %s755_s0, 8192, %s18_s16, [#allocation4], %s668_s25, %s668_s25, %s669_s26  }
  0x13   :  { %s670_s29 = smov [#allocation6]   ;;  %s617_s7 = scalar_lea.hbm %s757_s2, 2048 }
  0x14   :  { %s31_s30 = sshll.u32 %s670_s29, 4  ;;  %p618_p8 = scmp.ne.s32.totalorder %s757_s2, %s617_s7  ;;  %s32_s30 = int_to_ptr.vmem [resolvable:$true] %s31_s30 }
  0x15   :  { %p621_p9 = scmp.lt.u32.totalorder %s617_s7, %s757_s2 }
  0x17   :  { %p623_p10 = pnand %p621_p9, %p618_p8 }
  0x19   :  { %626 = shalt.err (!%p623_p10)
}
  0x1a   :  { %s627_s12 = scalar_lea.vmem %s32_s30, 2048  ;;  %p632_p12 = scmp.lt.s32.totalorder %s32_s30, %s32_s30 }
  0x1b   :  { %p628_p11 = scmp.ne.s32.totalorder %s32_s30, %s627_s12  ;;  %p633_p13 = scmp.lt.s32.totalorder %s627_s12, %s627_s12 }
  0x1d   :  { %p634_p0 = por %p633_p13, %p632_p12 }
  0x1f   :  { %p635_p1 = pnand %p634_p0, %p628_p11 }
  0x21   :  { %638 = shalt.err (!%p635_p1)
}
  0x22   :  { %s671_s0 = smov 128   ;;  %s672_s13 = smov 8  }
  0x23   :  { %37 = dma.hbm_to_vmem [thread:$0]  %s757_s2, 2048, %s32_s30, [#allocation7], %s671_s0, %s671_s0, %s672_s13  }
  0x24   :  { %661 = dma.done.wait [#allocation4], 8192  }
  0x25   :  { %662 = vsyncadd [#allocation4], 4294959104 }
  0x26   :  { %663 = dma.done.wait [#allocation7], 2048  }
  0x27   :  { %664 = vsyncadd [#allocation7], 4294965248  ;;  %v90_v0 = vld [vmem:[#allocation3 + $0x100] sm:$0xff]  ;;  %v122_v1 = vld [vmem:[#allocation3 + $0x108] sm:$0xff]  ;;  %vm674_vm0 = vmmov 0   ;;  %s676_s17 = smov 64  }
  0x28   :  { %v154_v2 = vld [vmem:[#allocation3 + $0x110] sm:$0xff]  ;;  %v138_v3 = vmax.f32 %v90_v0, %v122_v1  ;;  %v82_v4 = vld [vmem:[#allocation3] sm:$0xff]  ;;  %v114_v5 = vld [vmem:[#allocation3 + $0x8] sm:$0xff]  ;;  %vm305_vm1 = vcmask 130112   ;;  %vm312_vm2 = vcmask 195712   ;;  %vm319_vm3 = vcmask 261312  }
  0x29   :  { %v186_v6 = vld [vmem:[#allocation3 + $0x118] sm:$0xff]  ;;  %v130_v7 = vmax.f32 %v82_v4, %v114_v5  ;;  %v146_v8 = vld [vmem:[#allocation3 + $0x10] sm:$0xff]  ;;  %v91_v9 = vld [vmem:[#allocation3 + $0x120] sm:$0xff]  ;;  %vm326_vm4 = vcmask 326912   ;;  %vm333_vm5 = vcmask 392512   ;;  %vm340_vm6 = vcmask 458112  }
  0x2a   :  { %v170_v10 = vmax.f32 %v138_v3, %v154_v2  ;;  %v178_v11 = vld [vmem:[#allocation3 + $0x18] sm:$0xff]  ;;  %v123_v12 = vld [vmem:[#allocation3 + $0x128] sm:$0xff]  ;;  %v155_v13 = vld [vmem:[#allocation3 + $0x130] sm:$0xff]  ;;  %vm347_vm7 = vcmask 523712   ;;  %vm388_vm8 = vcmask 1041409   ;;  %vm395_vm9 = vcmask 523264  }
  0x2b   :  { %v162_v14 = vmax.f32 %v130_v7, %v146_v8  ;;  %v139_v15 = vmax.f32 %v91_v9, %v123_v12  ;;  %v83_v16 = vld [vmem:[#allocation3 + $0x20] sm:$0xff]  ;;  %v115_v17 = vld [vmem:[#allocation3 + $0x28] sm:$0xff]  ;;  %v147_v18 = vld [vmem:[#allocation3 + $0x30] sm:$0xff]  ;;  %s677_s19 = smov [#allocation8]  }
  0x2c   :  { %v202_v19 = vmax.f32 %v170_v10, %v186_v6  ;;  %v187_v20 = vld [vmem:[#allocation3 + $0x138] sm:$0xff]  ;;  %v131_v21 = vmax.f32 %v83_v16, %v115_v17  ;;  %v92_v22 = vld [vmem:[#allocation3 + $0x140] sm:$0xff]  ;;  %v124_v23 = vld [vmem:[#allocation3 + $0x148] sm:$0xff]  ;;  %s497_s20 = sshll.u32 %s677_s19, 4  ;;  %s498_s20 = int_to_ptr.vmem [resolvable:$true] %s497_s20 }
  0x2d   :  { %v194_v24 = vmax.f32 %v162_v14, %v178_v11  ;;  %v171_v25 = vmax.f32 %v139_v15, %v155_v13  ;;  %v179_v26 = vld [vmem:[#allocation3 + $0x38] sm:$0xff]  ;;  %v140_v27 = vmax.f32 %v92_v22, %v124_v23  ;;  %v156_v28 = vld [vmem:[#allocation3 + $0x150] sm:$0xff]  ;;  %v84_v29 = vld [vmem:[#allocation3 + $0x40] sm:$0xff]  ;;  %s639_s21 = scalar_lea.vmem %s498_s20, 32  ;;  %p644_p3 = scmp.lt.s32.totalorder %s498_s20, %s498_s20 }
  0x2e   :  { %261 = vmax.xlane.f32.xlu1 %v202_v19  ;;  %v163_v30 = vmax.f32 %v131_v21, %v147_v18  ;;  %v188_v31 = vld [vmem:[#allocation3 + $0x158] sm:$0xff]  ;;  %v116_v32 = vld [vmem:[#allocation3 + $0x48] sm:$0xff]  ;;  %v148_v33 = vld [vmem:[#allocation3 + $0x50] sm:$0xff]  ;;  %p640_p2 = scmp.ne.s32.totalorder %s498_s20, %s639_s21  ;;  %p645_p4 = scmp.lt.s32.totalorder %s639_s21, %s639_s21 }
  0x2f   :  { %245 = vmax.xlane.f32.xlu0 %v194_v24  ;;  %v203_v34 = vmax.f32 %v171_v25, %v187_v20  ;;  %v172_v35 = vmax.f32 %v140_v27, %v156_v28  ;;  %v132_v36 = vmax.f32 %v84_v29, %v116_v32  ;;  %v93_v37 = vld [vmem:[#allocation3 + $0x160] sm:$0xff]  ;;  %v125_v38 = vld [vmem:[#allocation3 + $0x168] sm:$0xff]  ;;  %v157_v39 = vld [vmem:[#allocation3 + $0x170] sm:$0xff] }
  0x30   :  { %v195_v40 = vmax.f32 %v163_v30, %v179_v26  ;;  %v180_v41 = vld [vmem:[#allocation3 + $0x58] sm:$0xff]  ;;  %v141_v42 = vmax.f32 %v93_v37, %v125_v38  ;;  %v85_v43 = vld [vmem:[#allocation3 + $0x60] sm:$0xff]  ;;  %v117_v44 = vld [vmem:[#allocation3 + $0x68] sm:$0xff]  ;;  %p646_p5 = por %p645_p4, %p644_p3 }
  0x31   :  { %v164_v45 = vmax.f32 %v132_v36, %v148_v33  ;;  %v133_v46 = vmax.f32 %v85_v43, %v117_v44  ;;  %v149_v47 = vld [vmem:[#allocation3 + $0x70] sm:$0xff]  ;;  %v94_v48 = vld [vmem:[#allocation3 + $0x180] sm:$0xff]  ;;  %v204_v49 = vmax.f32 %v172_v35, %v188_v31  ;;  %v189_v51 = vld [vmem:[#allocation3 + $0x178] sm:$0xff]  ;;  %v673_v35 = vmov 0.0|0.0  }
  0x32   :  { %263 = vmax.xlane.f32.xlu1 %v203_v34  ;;  %v173_v50 = vmax.f32 %v141_v42, %v157_v39  ;;  %v181_v52 = vld [vmem:[#allocation3 + $0x78] sm:$0xff]  ;;  %v126_v53 = vld [vmem:[#allocation3 + $0x188] sm:$0xff]  ;;  %v158_v57 = vld [vmem:[#allocation3 + $0x190] sm:$0xff]  ;;  %560 = vmatprep.subr.bf16.mxu0 %v673_v35  ;;  %p647_p6 = pnand %p646_p5, %p640_p2 }
  0x33   :  { %247 = vmax.xlane.f32.xlu0 %v195_v40  ;;  %v196_v54 = vmax.f32 %v164_v45, %v180_v41  ;;  %v165_v55 = vmax.f32 %v133_v46, %v149_v47  ;;  %v142_v56 = vmax.f32 %v94_v48, %v126_v53  ;;  %v86_v58 = vld [vmem:[#allocation3 + $0x80] sm:$0xff]  ;;  %v118_v59 = vld [vmem:[#allocation3 + $0x88] sm:$0xff]  ;;  %v150_v61 = vld [vmem:[#allocation3 + $0x90] sm:$0xff] }
  0x34   :  { %v134_v60 = vmax.f32 %v86_v58, %v118_v59  ;;  %v95_v62 = vld [vmem:[#allocation3 + $0x1a0] sm:$0xff]  ;;  %v127_v63 = vld [vmem:[#allocation3 + $0x1a8] sm:$0xff]  ;;  %v205_v2 = vmax.f32 %v173_v50, %v189_v51  ;;  %v190_v4 = vld [vmem:[#allocation3 + $0x198] sm:$0xff] }
  0x35   :  { %v143_v0 = vmax.f32 %v95_v62, %v127_v63  ;;  %v87_v1 = vld [vmem:[#allocation3 + $0xa0] sm:$0xff]  ;;  %v174_v3 = vmax.f32 %v142_v56, %v158_v57  ;;  %v159_v5 = vld [vmem:[#allocation3 + $0x1b0] sm:$0xff]  ;;  %v119_v6 = vld [vmem:[#allocation3 + $0xa8] sm:$0xff]  ;;  %v197_v7 = vmax.f32 %v165_v55, %v181_v52 }
  0x36   :  { %265 = vmax.xlane.f32.xlu1 %v204_v49  ;;  %v166_v8 = vmax.f32 %v134_v60, %v150_v61  ;;  %v182_v9 = vld [vmem:[#allocation3 + $0x98] sm:$0xff]  ;;  %v135_v10 = vmax.f32 %v87_v1, %v119_v6  ;;  %v96_v11 = vld [vmem:[#allocation3 + $0x1c0] sm:$0xff]  ;;  %v128_v12 = vld [vmem:[#allocation3 + $0x1c8] sm:$0xff] }
  0x37   :  { %249 = vmax.xlane.f32.xlu0 %v196_v54  ;;  %v151_v13 = vld [vmem:[#allocation3 + $0xb0] sm:$0xff]  ;;  %v88_v14 = vld [vmem:[#allocation3 + $0xc0] sm:$0xff]  ;;  %v120_v15 = vld [vmem:[#allocation3 + $0xc8] sm:$0xff]  ;;  %v175_v16 = vmax.f32 %v143_v0, %v159_v5  ;;  %v206_v17 = vmax.f32 %v174_v3, %v190_v4  ;;  %v144_v20 = vmax.f32 %v96_v11, %v128_v12 }
  0x38   :  { %v191_v18 = vld [vmem:[#allocation3 + $0x1b8] sm:$0xff]  ;;  %v160_v21 = vld [vmem:[#allocation3 + $0x1d0] sm:$0xff]  ;;  %v198_v22 = vmax.f32 %v166_v8, %v182_v9  ;;  %v167_v23 = vmax.f32 %v135_v10, %v151_v13  ;;  %v136_v24 = vmax.f32 %v88_v14, %v120_v15  ;;  %v97_v26 = vld [vmem:[#allocation3 + $0x1e0] sm:$0xff]  ;;  %v675_v9 = vmov 0.0  }
  0x39   :  { %v183_v19 = vld [vmem:[#allocation3 + $0xb8] sm:$0xff]  ;;  %v152_v25 = vld [vmem:[#allocation3 + $0xd0] sm:$0xff]  ;;  %v129_v27 = vld [vmem:[#allocation3 + $0x1e8] sm:$0xff]  ;;  %v207_v31 = vmax.f32 %v175_v16, %v191_v18  ;;  %v176_v33 = vmax.f32 %v144_v20, %v160_v21  ;;  %557 = vmatprep.mubr.msk.f32.mxu0 %vm674_vm0, %v675_v9  ;;  %v294_v15 = vlaneseq }
  0x3a   :  { %267 = vmax.xlane.f32.xlu1 %v205_v2  ;;  %v89_v28 = vld [vmem:[#allocation3 + $0xe0] sm:$0xff]  ;;  %v121_v29 = vld [vmem:[#allocation3 + $0xe8] sm:$0xff]  ;;  %v145_v34 = vmax.f32 %v97_v26, %v129_v27  ;;  %v199_v37 = vmax.f32 %v167_v23, %v183_v19  ;;  %v192_v38 = vld [vmem:[#allocation3 + $0x1d8] sm:$0xff]  ;;  %v168_v39 = vmax.f32 %v136_v24, %v152_v25 }
  0x3b   :  { %251 = vmax.xlane.f32.xlu0 %v197_v7  ;;  %v397_v30 = vld [vmem:[#allocation6] sm:$0xff]  ;;  %v398_v32 = vld [vmem:[#allocation6 + $0x8] sm:$0xff]  ;;  %v184_v40 = vld [vmem:[#allocation3 + $0xd8] sm:$0xff]  ;;  %v137_v42 = vmax.f32 %v89_v28, %v121_v29  ;;  %v208_v47 = vmax.f32 %v176_v33, %v192_v38  ;;  %v295_v18 = vand.u32 127, %v294_v15  ;;  %v297_v23 = vshrl.u32 %v294_v15, 7 }
  0x3c   :  { %v561_v36 = vpack.c.bf16 %v398_v32, %v397_v30  ;;  %v161_v41 = vld [vmem:[#allocation3 + $0x1f0] sm:$0xff]  ;;  %v400_v45 = vld [vmem:[#allocation6 + $0x18] sm:$0xff]  ;;  %v200_v49 = vmax.f32 %v168_v39, %v184_v40  ;;  %v401_v53 = vld [vmem:[#allocation6 + $0x20] sm:$0xff] }
  0x3d   :  { %v153_v43 = vld [vmem:[#allocation3 + $0xf0] sm:$0xff]  ;;  %v177_v48 = vmax.f32 %v145_v34, %v161_v41  ;;  %v193_v50 = vld [vmem:[#allocation3 + $0x1f8] sm:$0xff]  ;;  %v402_v54 = vld [vmem:[#allocation6 + $0x28] sm:$0xff]  ;;  %v300_v20 = vadd.s32 4294967288, %v295_v18  ;;  %v314_v24 = vadd.s32 4294967272, %v295_v18  ;;  %v321_v25 = vadd.s32 4294967264, %v295_v18 }
  0x3e   :  { %269 = vmax.xlane.f32.xlu1 %v206_v17  ;;  %562 = vmatpush3.bf16.msra.mxu0 %v561_v36  ;;  %v399_v44 = vld [vmem:[#allocation6 + $0x10] sm:$0xff]  ;;  %v169_v51 = vmax.f32 %v137_v42, %v153_v43  ;;  %v185_v52 = vld [vmem:[#allocation3 + $0xf8] sm:$0xff]  ;;  %v567_v55 = vpack.c.bf16 %v402_v54, %v401_v53  ;;  %v405_v61 = vld [vmem:[#allocation6 + $0x40] sm:$0xff]  ;;  %v328_v29 = vadd.s32 4294967256, %v295_v18  ;;  %v298_v32 = vsub.s32 %v295_v18, %v297_v23 }
  0x3f   :  { %253 = vmax.xlane.f32.xlu0 %v198_v22  ;;  %563 = vmatprep.subr.bf16.mxu0 %v673_v35  ;;  %v564_v46 = vpack.c.bf16 %v400_v45, %v399_v44  ;;  %v209_v56 = vmax.f32 %v177_v48, %v193_v50  ;;  %v403_v58 = vld [vmem:[#allocation6 + $0x30] sm:$0xff]  ;;  %v404_v59 = vld [vmem:[#allocation6 + $0x38] sm:$0xff]  ;;  %v406_v62 = vld [vmem:[#allocation6 + $0x48] sm:$0xff]  ;;  %v307_v22 = vadd.s32 4294967280, %v295_v18  ;;  %v303_v27 = vsub.s32 %v300_v20, %v297_v23 }
  0x40   :  { %v201_v57 = vmax.f32 %v169_v51, %v185_v52  ;;  %v570_v60 = vpack.c.bf16 %v404_v59, %v403_v58  ;;  %v573_v63 = vpack.c.bf16 %v406_v62, %v405_v61  ;;  %v407_v0 = vld [vmem:[#allocation6 + $0x50] sm:$0xff]  ;;  %v408_v1 = vld [vmem:[#allocation6 + $0x58] sm:$0xff]  ;;  %v409_v3 = vld [vmem:[#allocation6 + $0x60] sm:$0xff]  ;;  %v317_v33 = vsub.s32 %v314_v24, %v297_v23 }
  0x41   :  { %v576_v2 = vpack.c.bf16 %v408_v1, %v407_v0  ;;  %v410_v4 = vld [vmem:[#allocation6 + $0x68] sm:$0xff]  ;;  %v411_v6 = vld [vmem:[#allocation6 + $0x70] sm:$0xff]  ;;  %v412_v7 = vld [vmem:[#allocation6 + $0x78] sm:$0xff]  ;;  %v310_v30 = vsub.s32 %v307_v22, %v297_v23  ;;  %v324_v34 = vsub.s32 %v321_v25, %v297_v23  ;;  %v342_v39 = vadd.s32 4294967240, %v295_v18 }
  0x42   :  { %271 = vmax.xlane.f32.xlu1 %v207_v31  ;;  %565 = vmatpush3.bf16.msra.mxu0 %v564_v46  ;;  %v579_v5 = vpack.c.bf16 %v410_v4, %v409_v3  ;;  %v582_v8 = vpack.c.bf16 %v412_v7, %v411_v6  ;;  %v277_v10 = vld [vmem:[%s756_s1] sm:$0x3]  ;;  %v335_v31 = vadd.s32 4294967248, %v295_v18 }
  0x43   :  { %255 = vmax.xlane.f32.xlu0 %v199_v37  ;;  %566 = vmatprep.subr.bf16.mxu0 %v673_v35  ;;  %v331_v37 = vsub.s32 %v328_v29, %v297_v23  ;;  %v345_v54 = vsub.s32 %v342_v39, %v297_v23 }
  0x44   :  { %v338_v42 = vsub.s32 %v335_v31, %v297_v23 }
  0x46   :  { %273 = vmax.xlane.f32.xlu1 %v208_v47  ;;  %568 = vmatpush3.bf16.msra.mxu0 %v567_v55 }
  0x47   :  { %257 = vmax.xlane.f32.xlu0 %v200_v49  ;;  %569 = vmatprep.subr.bf16.mxu0 %v673_v35 }
  0x4a   :  { %275 = vmax.xlane.f32.xlu1 %v209_v56  ;;  %571 = vmatpush3.bf16.msra.mxu0 %v570_v60 }
  0x4b   :  { %259 = vmax.xlane.f32.xlu0 %v201_v57  ;;  %572 = vmatprep.subr.bf16.mxu0 %v673_v35 }
  0x4e   :  { %574 = vmatpush3.bf16.msra.mxu0 %v573_v63 }
  0x4f   :  { %575 = vmatprep.subr.bf16.mxu0 %v673_v35 }
  0x52   :  { %577 = vmatpush3.bf16.msra.mxu0 %v576_v2 }
  0x53   :  { %578 = vmatprep.subr.bf16.mxu0 %v673_v35 }
  0x56   :  { %580 = vmatpush3.bf16.msra.mxu0 %v579_v5 }
  0x57   :  { %581 = vmatprep.subr.bf16.mxu0 %v673_v35 }
  0x5a   :  { %583 = vmatpush3.bf16.msra.mxu0 %v582_v8 }
  0x61   :  { %392 = vrot.lane.b32.xlu0 %v277_v10, %s676_s17 }
  0xbb   :  { %v262_v11 = vpop.xlane.xlu1 %261 }
  0xbc   :  { %v246_v12 = vpop.xlane.xlu0 %245  ;;  %v352_v43 = vrot.slane %v262_v11, %v298_v32 }
  0xbd   :  { %v299_v46 = vrot.slane %v246_v12, %v298_v32 }
  0xbf   :  { %v264_v13 = vpop.xlane.xlu1 %263 }
  0xc0   :  { %v248_v14 = vpop.xlane.xlu0 %247  ;;  %v356_v36 = vrot.slane %v264_v13, %v303_v27 }
  0xc1   :  { %v304_v40 = vrot.slane %v248_v14, %v303_v27  ;;  %v507_v14 = vld [vmem:[%s758_s3] ss:$0 sm:$0xff] }
  0xc2   :  { %v357_v50 = vsel %vm305_vm1, %v356_v36, %v352_v43 }
  0xc3   :  { %v266_v16 = vpop.xlane.xlu1 %265  ;;  %v306_v55 = vsel %vm305_vm1, %v304_v40, %v299_v46 }
  0xc4   :  { %v250_v17 = vpop.xlane.xlu0 %249  ;;  %v361_v41 = vrot.slane %v266_v16, %v310_v30 }
  0xc5   :  { %v311_v44 = vrot.slane %v250_v17, %v310_v30 }
  0xc6   :  { %v362_v56 = vsel %vm312_vm2, %v361_v41, %v357_v50 }
  0xc7   :  { %v268_v19 = vpop.xlane.xlu1 %267  ;;  %v313_v59 = vsel %vm312_vm2, %v311_v44, %v306_v55 }
  0xc8   :  { %v252_v21 = vpop.xlane.xlu0 %251  ;;  %v366_v45 = vrot.slane %v268_v19, %v317_v33 }
  0xc9   :  { %v318_v47 = vrot.slane %v252_v21, %v317_v33 }
  0xca   :  { %v367_v60 = vsel %vm319_vm3, %v366_v45, %v362_v56 }
  0xcb   :  { %v270_v26 = vpop.xlane.xlu1 %269  ;;  %v320_v62 = vsel %vm319_vm3, %v318_v47, %v313_v59 }
  0xcc   :  { %v254_v28 = vpop.xlane.xlu0 %253  ;;  %v371_v48 = vrot.slane %v270_v26, %v324_v34 }
  0xcd   :  { %v325_v51 = vrot.slane %v254_v28, %v324_v34 }
  0xce   :  { %v372_v63 = vsel %vm326_vm4, %v371_v48, %v367_v60 }
  0xcf   :  { %v272_v35 = vpop.xlane.xlu1 %271  ;;  %v327_v1 = vsel %vm326_vm4, %v325_v51, %v320_v62 }
  0xd0   :  { %v256_v38 = vpop.xlane.xlu0 %255  ;;  %v376_v52 = vrot.slane %v272_v35, %v331_v37 }
  0xd1   :  { %v332_v57 = vrot.slane %v256_v38, %v331_v37 }
  0xd2   :  { %v377_v2 = vsel %vm333_vm5, %v376_v52, %v372_v63 }
  0xd3   :  { %v274_v49 = vpop.xlane.xlu1 %273  ;;  %v334_v5 = vsel %vm333_vm5, %v332_v57, %v327_v1 }
  0xd4   :  { %v258_v53 = vpop.xlane.xlu0 %257  ;;  %v381_v58 = vrot.slane %v274_v49, %v338_v42 }
  0xd5   :  { %v339_v61 = vrot.slane %v258_v53, %v338_v42 }
  0xd6   :  { %v382_v6 = vsel %vm340_vm6, %v381_v58, %v377_v2 }
  0xd7   :  { %v276_v0 = vpop.xlane.xlu1 %275  ;;  %v341_v8 = vsel %vm340_vm6, %v339_v61, %v334_v5 }
  0xd8   :  { %v386_v3 = vrot.slane %v276_v0, %v345_v54  ;;  %v260_v4 = vpop.xlane.xlu0 %259 }
  0xd9   :  { %v346_v7 = vrot.slane %v260_v4, %v345_v54 }
  0xda   :  { %v387_v9 = vsel %vm347_vm7, %v386_v3, %v382_v6 }
  0xdb   :  { %v348_v10 = vsel %vm347_vm7, %v346_v7, %v341_v8 }
  0xdc   :  { %v393_v11 = vpop.permute.xlu0 %392  ;;  %v389_v12 = vsel %vm388_vm8, %v387_v9, %v348_v10 }
  0xdd   :  { %v396_v13 = vsel %vm395_vm9, %v389_v12, %v393_v11 }
  0xde   :  { %558 = vmatmul.mubr.f32.vlgmr.msra.gmra.mrb[0].mxu0 %v396_v13 }
 0x1b1   :  { %v486_v15 = vpop.f32.mrb[0].mxu0 }
 0x1b2   :  { %v487_v16 = vadd.f32 %v507_v14, %v486_v15  ;;  %v559_v17 = vpop.f32.mrb[1].mxu0 }
 0x1b4   :  { %490 = vst [vmem:[#allocation8] sm:$0x3] %v487_v16 }
 0x1b5   :  { %650 = shalt.err (!%p647_p6)
}
 0x1b6   :  { %s651_s24 = scalar_lea.hbm %s759_s4, 32 }
 0x1b7   :  { %p652_p7 = scmp.ne.s32.totalorder %s759_s4, %s651_s24  ;;  %p655_p8 = scmp.lt.u32.totalorder %s651_s24, %s759_s4 }
 0x1b9   :  { %p657_p9 = pnand %p655_p8, %p652_p7 }
 0x1bb   :  { %660 = shalt.err (!%p657_p9)
}
 0x1bc   :  { %500 = dma.vmem_to_hbm [thread:$0]  %s498_s20, 32, %s759_s4, [#allocation5]  }
 0x1bd   :  { %665 = dma.done.wait [#allocation5], 32  }
 0x1be   :  { %666 = vsyncadd [#allocation5], 4294967264 }
 0x1bf   :  { %504 = vsyncpa [#allocation4], 1 }
 0x1c0   :  { %505 = vsyncpa [#allocation7], 1 }
 0x1c1   :  { %506 = vsyncpa [#allocation5], 1 }

</bundles_post_ra>
